<compile_context>
chip_gen: v7x
topology: tpu7x:2x2x1
jax: 0.10.0
libtpu: 0.0.40
codegen_flags: <defaults>
</compile_context>

<pallas_src>
import functools

import jax
import jax.numpy as jnp
from jax import lax
from jax.experimental import pallas as pl
from jax.experimental.pallas import tpu as pltpu

GEM_P = 3.0
GEM_EPS = 1e-6


def _round_up(v, m):
    return ((v + m - 1) // m) * m


# --------------------------------------------------------------------------
# Pallas kernel: GeM pooling + L2 normalize
#   grid = (B, num_hw_chunks); HW is the (last, "arbitrary") reduction axis.
#   acc_ref is a (1, 1, C) f32 VMEM scratch holding sum(clamp(x, eps)^p).
# --------------------------------------------------------------------------
def _gem_kernel(x_ref, o_ref, acc_ref, *, p, eps, hw, n_chan,
                mask_rows, mask_chans):
    k = pl.program_id(1)

    @pl.when(k == 0)
    def _():
        acc_ref[...] = jnp.zeros_like(acc_ref)

    x = jnp.maximum(x_ref[...].astype(jnp.float32), eps)        # clamp(min=eps)
    if p == 3.0:
        xp = x * x * x                                           # exact, VPU-only
    else:
        xp = jnp.exp(p * jnp.log(x))                             # x ** p, x > 0
    if mask_rows:                                                # HW padding rows
        thw = x_ref.shape[1]
        row = k * thw + lax.broadcasted_iota(jnp.int32, xp.shape, 1)
        xp = jnp.where(row < hw, xp, 0.0)
    acc_ref[...] += jnp.sum(xp, axis=1, keepdims=True)           # (1, 1, C)

    @pl.when(k == pl.num_programs(1) - 1)
    def _():
        m = acc_ref[...] * (1.0 / hw)                            # avg over HxW
        g = jnp.exp(jnp.log(jnp.maximum(m, 1e-30)) * (1.0 / p))  # ** (1/p)
        if mask_chans:                                           # channel padding
            chan = lax.broadcasted_iota(jnp.int32, g.shape, 2)
            g = jnp.where(chan < n_chan, g, 0.0)
        nsq = jnp.sum(g * g, axis=-1, keepdims=True)
        o_ref[...] = g * lax.rsqrt(jnp.maximum(nsq, 1e-24))      # F.normalize(p=2)


def _gem_impl(x_nchw, p=GEM_P, eps=GEM_EPS, max_chunk_rows=2048):
    """x_nchw: (B, C, H, W) float. Returns (B, C) f32, rows L2-normalized."""
    B, C, H, W = x_nchw.shape
    HW = H * W

    # single layout change at the framework boundary: channels onto lanes
    x = jnp.transpose(x_nchw, (0, 2, 3, 1)).reshape(B, HW, C)

    # lane-dense channel dim (pad + in-kernel mask only when C % 128 != 0)
    Cp = C if C % 128 == 0 else _round_up(C, 128)

    # HW chunking: keep each (1, thw, Cp) input buffer <= ~4 MiB
    # (the pipeline double-buffers it), chunk rows a multiple of 8.
    bytes_per_row = Cp * x.dtype.itemsize
    cap = max(8, ((4 * 1024 * 1024) // bytes_per_row) // 8 * 8)
    cap = max(8, min(cap, (max_chunk_rows // 8) * 8))
    if HW <= cap:
        thw, HWp = HW, HW            # single chunk: block == full dim is legal
    else:
        thw = cap
        HWp = _round_up(HW, thw)

    if Cp != C or HWp != HW:
        x = jnp.pad(x, ((0, 0), (0, HWp - HW), (0, Cp - C)))

    kernel = functools.partial(
        _gem_kernel, p=float(p), eps=float(eps), hw=HW, n_chan=C,
        mask_rows=(HWp != HW), mask_chans=(Cp != C))

    out = pl.pallas_call(
        kernel,
        out_shape=jax.ShapeDtypeStruct((B, 1, Cp), jnp.float32),
        grid=(B, HWp // thw),
        in_specs=[pl.BlockSpec((1, thw, Cp), lambda b, k: (b, k, 0))],
        out_specs=pl.BlockSpec((1, 1, Cp), lambda b, k: (b, 0, 0)),
        scratch_shapes=[pltpu.VMEM((1, 1, Cp), jnp.float32)],
        compiler_params=pltpu.CompilerParams(
            dimension_semantics=("parallel", "arbitrary")),
    )(x)

    out = out.reshape(B, Cp)
    return out[:, :C] if Cp != C else out


gem_pool_normalize = jax.jit(_gem_impl,
                             static_argnames=("p", "eps", "max_chunk_rows"))


# --------------------------------------------------------------------------
# Pure-JAX reference (mirrors the PyTorch GeMPool.forward)
# --------------------------------------------------------------------------
def _gem_ref(x, p=GEM_P, eps=GEM_EPS):
    v = jnp.maximum(x.astype(jnp.float32), eps) ** p
    v = jnp.mean(v, axis=(2, 3)) ** (1.0 / p)          # (B, C)
    n = jnp.maximum(jnp.linalg.norm(v, axis=1, keepdims=True), 1e-12)
    return v / n


# --------------------------------------------------------------------------
if __name__ == "__main__":
    key = jax.random.PRNGKey(0)
    k1, k2 = jax.random.split(key)

    # case 1: CNN-feature-like map, lane-dense channels, single HW chunk
    x1 = jax.random.uniform(k1, (2, 256, 16, 16), jnp.float32)
    y1 = jax.block_until_ready(gem_pool_normalize(x1))
    assert y1.shape == (2, 256), y1.shape
    assert bool(jnp.all(jnp.isfinite(y1)))
    assert bool(jnp.allclose(jnp.linalg.norm(y1, axis=1), 1.0, atol=1e-4))
    assert bool(jnp.allclose(y1, _gem_ref(x1), rtol=2e-5, atol=2e-5))

    # case 2: ragged channel count (pad + mask) and a tiled HW reduction
    # (multi-chunk accumulation into the VMEM scratch, row masking)
    x2 = jax.random.uniform(k2, (2, 200, 10, 10), jnp.float32)
    y2 = jax.block_until_ready(gem_pool_normalize(x2, max_chunk_rows=64))
    assert y2.shape == (2, 200), y2.shape
    assert bool(jnp.all(jnp.isfinite(y2)))
    assert bool(jnp.allclose(jnp.linalg.norm(y2, axis=1), 1.0, atol=1e-4))
    assert bool(jnp.allclose(y2, _gem_ref(x2), rtol=2e-5, atol=2e-5))

    print("KERNEL_OK")
</pallas_src>

<mosaic_0001>
module attributes {stable_mosaic.version = 11 : i64} {
  func.func @_gem_kernel(%arg0: i32, %arg1: i32, %arg2: memref<1x256x256xf32, #tpu.memory_space<vmem>>, %arg3: memref<1x1x256xf32, #tpu.memory_space<vmem>>, %arg4: memref<1x1x256xf32, #tpu.memory_space<vmem>>) attributes {dimension_semantics = [#tpu.dimension_semantics<parallel>, #tpu.dimension_semantics<arbitrary>], iteration_bounds = array<i64: 2, 1>, scalar_prefetch = 0 : i64, scratch_operands = 1 : i64, tpu.core_type = #tpu.core_type<tc>, window_params = [{transform_indices = @transform_0, window_bounds = array<i64: 1, 256, 256>}, {transform_indices = @transform_1, window_bounds = array<i64: 1, 1, 256>}]} {
    %c0_i32 = arith.constant 0 : i32
    %0 = arith.cmpi eq, %arg1, %c0_i32 : i32
    %1 = arith.extui %0 : i1 to i32
    %c0_i32_0 = arith.constant 0 : i32
    %2 = arith.cmpi ne, %1, %c0_i32_0 : i32
    scf.if %2 {
      %cst_12 = arith.constant 0.000000e+00 : f32
      %16 = vector.broadcast %cst_12 : f32 to vector<1x1x256xf32>
      %c0_13 = arith.constant 0 : index
      %c0_14 = arith.constant 0 : index
      %c0_15 = arith.constant 0 : index
      %17 = vector.load %arg4[%c0_13, %c0_14, %c0_15] : memref<1x1x256xf32, #tpu.memory_space<vmem>>, vector<1x1x256xf32>
      tpu.vector_store %arg4[%c0_13, %c0_14, %c0_15], %16 {strides = array<i32>} : memref<1x1x256xf32, #tpu.memory_space<vmem>>, vector<1x1x256xf32>,
    } else {
    }
    %c0 = arith.constant 0 : index
    %c0_1 = arith.constant 0 : index
    %c0_2 = arith.constant 0 : index
    %3 = vector.load %arg2[%c0, %c0_1, %c0_2] : memref<1x256x256xf32, #tpu.memory_space<vmem>>, vector<1x256x256xf32>
    %cst = arith.constant 9.99999997E-7 : f32
    %4 = vector.broadcast %cst : f32 to vector<1x256x256xf32>
    %5 = arith.maximumf %3, %4 : vector<1x256x256xf32>
    %6 = arith.mulf %5, %5 : vector<1x256x256xf32>
    %7 = arith.mulf %6, %5 : vector<1x256x256xf32>
    %c0_3 = arith.constant 0 : index
    %c0_4 = arith.constant 0 : index
    %c0_5 = arith.constant 0 : index
    %8 = vector.load %arg4[%c0_3, %c0_4, %c0_5] : memref<1x1x256xf32, #tpu.memory_space<vmem>>, vector<1x1x256xf32>
    %cst_6 = arith.constant dense<0.000000e+00> : vector<1x256xf32>
    %9 = vector.multi_reduction <add>, %7, %cst_6 [1] : vector<1x256x256xf32> to vector<1x256xf32>
    %10 = vector.shape_cast %9 : vector<1x256xf32> to vector<1x1x256xf32>
    %11 = arith.addf %8, %10 : vector<1x1x256xf32>
    %c0_7 = arith.constant 0 : index
    %c0_8 = arith.constant 0 : index
    %c0_9 = arith.constant 0 : index
    %12 = vector.load %arg4[%c0_7, %c0_8, %c0_9] : memref<1x1x256xf32, #tpu.memory_space<vmem>>, vector<1x1x256xf32>
    tpu.vector_store %arg4[%c0_7, %c0_8, %c0_9], %11 {strides = array<i32>} : memref<1x1x256xf32, #tpu.memory_space<vmem>>, vector<1x1x256xf32>,
    %c0_i32_10 = arith.constant 0 : i32
    %13 = arith.cmpi eq, %arg1, %c0_i32_10 : i32
    %14 = arith.extui %13 : i1 to i32
    %c0_i32_11 = arith.constant 0 : i32
    %15 = arith.cmpi ne, %14, %c0_i32_11 : i32
    scf.if %15 {
      %c0_12 = arith.constant 0 : index
      %c0_13 = arith.constant 0 : index
      %c0_14 = arith.constant 0 : index
      %16 = vector.load %arg4[%c0_12, %c0_13, %c0_14] : memref<1x1x256xf32, #tpu.memory_space<vmem>>, vector<1x1x256xf32>
      %cst_15 = arith.constant 3.906250e-03 : f32
      %17 = vector.broadcast %cst_15 : f32 to vector<1x1x256xf32>
      %18 = arith.mulf %16, %17 : vector<1x1x256xf32>
      %cst_16 = arith.constant 1.000000e-30 : f32
      %19 = vector.broadcast %cst_16 : f32 to vector<1x1x256xf32>
      %20 = arith.maximumf %18, %19 : vector<1x1x256xf32>
      %21 = math.log %20 : vector<1x1x256xf32>
      %cst_17 = arith.constant 0.333333343 : f32
      %22 = vector.broadcast %cst_17 : f32 to vector<1x1x256xf32>
      %23 = arith.mulf %21, %22 : vector<1x1x256xf32>
      %24 = math.exp %23 : vector<1x1x256xf32>
      %25 = arith.mulf %24, %24 : vector<1x1x256xf32>
      %cst_18 = arith.constant dense<0.000000e+00> : vector<1x1xf32>
      %26 = vector.multi_reduction <add>, %25, %cst_18 [2] : vector<1x1x256xf32> to vector<1x1xf32>
      %27 = vector.shape_cast %26 : vector<1x1xf32> to vector<1x1x1xf32>
      %cst_19 = arith.constant 1.000000e-24 : f32
      %28 = vector.broadcast %cst_19 : f32 to vector<1x1x1xf32>
      %29 = arith.maximumf %27, %28 : vector<1x1x1xf32>
      %30 = math.rsqrt %29 : vector<1x1x1xf32>
      %31 = vector.broadcast %30 : vector<1x1x1xf32> to vector<1x1x256xf32>
      %32 = arith.mulf %24, %31 : vector<1x1x256xf32>
      %c0_20 = arith.constant 0 : index
      %c0_21 = arith.constant 0 : index
      %c0_22 = arith.constant 0 : index
      %33 = vector.load %arg3[%c0_20, %c0_21, %c0_22] : memref<1x1x256xf32, #tpu.memory_space<vmem>>, vector<1x1x256xf32>
      tpu.vector_store %arg3[%c0_20, %c0_21, %c0_22], %32 {strides = array<i32>} : memref<1x1x256xf32, #tpu.memory_space<vmem>>, vector<1x1x256xf32>,
    } else {
    }
    return
  }
  func.func @transform_0(%arg0: i32, %arg1: i32) -> (i32, i32, i32) {
    %c0_i32 = arith.constant 0 : i32
    %c0_i32_0 = arith.constant 0 : i32
    return %arg0, %arg1, %c0_i32 : i32, i32, i32
  }
  func.func @transform_1(%arg0: i32, %arg1: i32) -> (i32, i32, i32) {
    %c0_i32 = arith.constant 0 : i32
    %c0_i32_0 = arith.constant 0 : i32
    %c0_i32_1 = arith.constant 0 : i32
    return %arg0, %c0_i32, %c0_i32_0 : i32, i32, i32
  }
}

</mosaic_0001>

<bundles_post_ra>
// kernel: _gem_impl.1
= control target key start
LH: loop header
LB: loop body
LE: loop exit
PB: predicated region body
PF: predicated region fallthrough
CT: control target
= control target key end

     0   :  { %6 = vsyncpa [#allocation4], 0  ;;  %s1009_s0 = inlined_call_operand.hbm [shape: f32[2,256,256], index: 0, kind: input, shape index: {}]   ;;  %s1010_s1 = inlined_call_operand.vmem [shape: f32[2,1,256], index: 1, kind: output, shape index: {}]  }
   0x1   :  { %8 = vsyncpa [#allocation4 + $0x1], 0  ;;  %s807_s6 = smov 0   ;;  %s809_s7 = smov 0  }
   0x2   :  { %s811_s8 = smov 0   ;;  %s813_s9 = smov 0  }
   0x3   :  { %s815_s10 = smov 0   ;;  %s817_s11 = smov 0  }
   0x4 LB: > { %s632_s12 = sadd.s32 4294967295, %s790_s11   ;;  %s26_s13 = sadd.s32 1, %s786_s10  ;;  %s790_s11 = sphi %s817_s11, %s14_s11   ;;  %s786_s10 = sphi %s815_s10, %s1020_s10   ;;  %s782_s9 = sphi %s813_s9, %s1019_s9   ;;  %s778_s8 = sphi %s811_s8, %s1018_s8   ;;  %s774_s7 = sphi %s809_s7, %s1017_s7   ;;  %s770_s6 = sphi %s807_s6, %s1016_s6  }
   0x5   : > { %p28_p0 = scmp.ge.s32.totalorder %s26_s13, 2  ;;  %s35_s14 = sadd.s32 1, %s778_s8 }
   0x6   : > { %p42_p1 = scmp.ne.s32.totalorder %s778_s8, %s774_s7  ;;  %p43_p2 = scmp.eq.s32.totalorder %s790_s11, 0 }
   0x7   : > { %s1022_s13 = smov (%p28_p0, %s26_s13), 0  ;;  %p48_p4 = scmp.ne.s32.totalorder %s774_s7, %s770_s6 }
   0x8   : > { %p843_p3 = por %p43_p2, %p42_p1  ;;  %s30_s16 = ssub.s32 %s786_s10, %s1022_s13 }
   0x9   : > { %p49_p5 = scmp.eq.s32.totalorder %s632_s12, 0  ;;  %p33_p6 = scmp.eq.s32.totalorder %s30_s16, 0 }
   0xa   : > { %p651_p8 = scmp.lt.s32.totalorder %s790_s11, 2  ;;  %s98_s19 = sand.u32 1, %s778_s8  }
   0xb   : > { %p850_p7 = por %p49_p5, %p48_p4  ;;  %s644_s20 = sshll.u32 %s786_s10, 13 }
   0xc   : > { %s856_s18 = scalar_select %p33_p6, %s778_s8, %s35_s14  }
   0xd   : > { %s636_s21 = sshll.u32 %s98_s19, 9  ;;  %s863_s24 = scalar_lea.hbm %s1009_s0, %s644_s20 }
   0xe   : > { %s102_s25 = scalar_lea.vmem [#allocation3], %s636_s21  ;;  %p867_p9 = pnand %p651_p8, %p843_p3 }
   0xf   : > { %s112_s26 = sshll.u32 %s102_s25, 4  ;;  %s873_s28 = scalar_lea.sflag [#allocation4], %s98_s19  ;;  %s871_s26 = int_to_ptr.vmem [resolvable:$true] %s112_s26 }
  0x10   : > { %s710_s29 = scalar_lea.hbm %s863_s24, 8192  ;;  %p712_p11 = pneg %p867_p9 }
  0x11   : > { %p711_p10 = scmp.ne.s32.totalorder %s863_s24, %s710_s29  ;;  %s715_s3 = scalar_lea.hbm %s1009_s0, 16384 }
  0x12   : > { %p716_p0 = scmp.lt.u32.totalorder %s863_s24, %s1009_s0  ;;  %p717_p1 = scmp.lt.u32.totalorder %s715_s3, %s710_s29 }
  0x13   : > { %p713_p12 = pnand %p712_p11, %p711_p10  ;;  %p719_p3 = scmp.lt.u32.totalorder %s710_s29, %s863_s24 }
  0x14   : > { %p718_p2 = por %p717_p1, %p716_p0 }
  0x15   : > { %p714_p13 = pneg %p713_p12 }
  0x16   : > { %p720_p4 = por %p719_p3, %p718_p2 }
  0x18   : > { %p721_p5 = pnand %p720_p4, %p714_p13 }
  0x1a   : > { %724 = shalt.err (!%p721_p5)
}
  0x1b   : > { %s725_s6 = scalar_lea.vmem %s871_s26, 8192  ;;  %s792_s12 = smov [#allocation3]  }
  0x1c   : > { %p726_p6 = scmp.ne.s32.totalorder %s871_s26, %s725_s6  ;;  %s730_s14 = sshll.u32 %s792_s12, 4  ;;  %s731_s14 = int_to_ptr.vmem [resolvable:$false] %s730_s14 }
  0x1d   : > { %s732_s15 = scalar_lea.vmem %s731_s14, 16384  ;;  %p733_p12 = scmp.lt.s32.totalorder %s871_s26, %s731_s14 }
  0x1e   : > { %p728_p8 = pnand %p726_p6, %p712_p11  ;;  %p734_p0 = scmp.lt.s32.totalorder %s732_s15, %s725_s6 }
  0x20   : > { %p729_p10 = pneg %p728_p8  ;;  %p735_p1 = por %p734_p0, %p733_p12 }
  0x22   : > { %p736_p2 = pnand %p735_p1, %p729_p10 }
  0x24   : > { %739 = shalt.err (!%p736_p2)
}
  0x25   : > { %s793_s16 = smov 256   ;;  %s794_s19 = smov 16  }
  0x26   : > { %650 = dma.hbm_to_vmem [thread:$0]  (!%p867_p9), %s863_s24, 8192, %s871_s26, %s873_s28, %s793_s16, %s793_s16, %s794_s19  }
  0x27   : > { %p639_p11 = scmp.ge.s32.totalorder %s790_s11, 1  ;;  %p120_p13 = scmp.lt.s32.totalorder %s790_s11, 3 }
  0x29   : > { %p121_p3 = pnand %p639_p11, %p120_p13 }
  0x2a   : > { %s126_s20 = sand.u32 (!%p121_p3), 1, %s774_s7  }
  0x2b   : > { %124 = sbr.rel (%p121_p3) target bundleno = 351 (0x15f), region = 24  ;;  %s640_s21 = sshll.u32 (!%p121_p3), %s126_s20, 9 }
  0x2c   : > { %s127_s22 = scalar_lea.sflag (!%p121_p3), [#allocation4], %s126_s20  ;;  %s904_s23 = scalar_lea.vmem (!%p121_p3), [#allocation3], %s640_s21 }
  0x32   : > { %765 = dma.done.wait (%p850_p7), %s127_s22, 8192  }
  0x33   : > { %767 = vsyncadd (%p850_p7), %s127_s22, 4294959104  ;;  %v157_v0 = vlaneseq  ;;  %v795_v2 = vmov 0.0   ;;  %v162_v3 = vld [vmem:[%s904_s23] sm:$0xff]  ;;  %v164_v4 = vld [vmem:[%s904_s23 + $0x10] sm:$0xff]  ;;  %vm540_vm1 = vcmask 1040384   ;;  %p149_p7 = scmp.lt.s32.totalorder %s782_s9, 1 }
  0x34   : > { %v163_v5 = vld [vmem:[%s904_s23 + $0x8] sm:$0xff]  ;;  %v165_v6 = vld [vmem:[%s904_s23 + $0x18] sm:$0xff]  ;;  %v226_v7 = vmax.f32 %v162_v3, 1e-06  ;;  %v228_v8 = vmax.f32 %v164_v4, 1e-06 }
  0x35   : > { %vm911_vm0 = vcmp.lt.s32.totalorder %v157_v0, 256  ;;  %v166_v9 = vld [vmem:[%s904_s23 + $0x20] sm:$0xff]  ;;  %v227_v10 = vmax.f32 %v163_v5, 1e-06  ;;  %v229_v11 = vmax.f32 %v165_v6, 1e-06 }
  0x36   : > { %161 = vst.msk [vmem:[#allocation2] sm:$0x3] %vm911_vm0, %v795_v2  ;;  %v167_v12 = vld [vmem:[%s904_s23 + $0x28] sm:$0xff]  ;;  %v230_v13 = vmax.f32 %v166_v9, 1e-06  ;;  %v290_v14 = vmul.f32 %v226_v7, %v226_v7  ;;  %v292_v15 = vmul.f32 %v228_v8, %v228_v8  ;;  %v168_v16 = vld [vmem:[%s904_s23 + $0x30] sm:$0xff] }
  0x37   : > { %v231_v17 = vmax.f32 %v167_v12, 1e-06  ;;  %v291_v18 = vmul.f32 %v227_v10, %v227_v10  ;;  %v293_v19 = vmul.f32 %v229_v11, %v229_v11  ;;  %v169_v20 = vld [vmem:[%s904_s23 + $0x38] sm:$0xff]  ;;  %v232_v21 = vmax.f32 %v168_v16, 1e-06  ;;  %v170_v25 = vld [vmem:[%s904_s23 + $0x40] sm:$0xff] }
  0x38   : > { %v294_v22 = vmul.f32 %v230_v13, %v230_v13  ;;  %v354_v23 = vmul.f32 %v290_v14, %v226_v7  ;;  %v356_v24 = vmul.f32 %v292_v15, %v228_v8  ;;  %v233_v26 = vmax.f32 %v169_v20, 1e-06  ;;  %v171_v30 = vld [vmem:[%s904_s23 + $0x48] sm:$0xff]  ;;  %v172_v35 = vld [vmem:[%s904_s23 + $0x50] sm:$0xff]  ;;  %v173_v40 = vld [vmem:[%s904_s23 + $0x58] sm:$0xff]  ;;  %s1024_s9 = smov (!%p149_p7, %s782_s9), 1 }
  0x39   : > { %v295_v27 = vmul.f32 %v231_v17, %v231_v17  ;;  %v355_v28 = vmul.f32 %v291_v18, %v227_v10  ;;  %v357_v29 = vmul.f32 %v293_v19, %v229_v11  ;;  %v234_v31 = vmax.f32 %v170_v25, 1e-06  ;;  %v174_v45 = vld [vmem:[%s904_s23 + $0x60] sm:$0xff]  ;;  %v175_v50 = vld [vmem:[%s904_s23 + $0x68] sm:$0xff]  ;;  %v176_v51 = vld [vmem:[%s904_s23 + $0x70] sm:$0xff]  ;;  %s641_s17 = sshll.u32 %s1024_s9, 1 }
  0x3a   : > { %v296_v32 = vmul.f32 %v232_v21, %v232_v21  ;;  %v358_v33 = vmul.f32 %v294_v22, %v230_v13  ;;  %v419_v34 = vadd.f32 %v356_v24, %v354_v23  ;;  %v235_v36 = vmax.f32 %v171_v30, 1e-06  ;;  %v177_v56 = vld [vmem:[%s904_s23 + $0x78] sm:$0xff]  ;;  %v178_v62 = vld [vmem:[%s904_s23 + $0x80] sm:$0xff]  ;;  %v179_v63 = vld [vmem:[%s904_s23 + $0x88] sm:$0xff]  ;;  %s152_s26 = scalar_lea.vmem %s1010_s1, %s641_s17 }
  0x3b   : > { %v297_v37 = vmul.f32 %v233_v26, %v233_v26  ;;  %v359_v38 = vmul.f32 %v295_v27, %v231_v17  ;;  %v456_v39 = vadd.f32 %v357_v29, %v355_v28  ;;  %v236_v41 = vmax.f32 %v172_v35, 1e-06  ;;  %v180_v9 = vld [vmem:[%s904_s23 + $0x90] sm:$0xff]  ;;  %v181_v10 = vld [vmem:[%s904_s23 + $0x98] sm:$0xff]  ;;  %v182_v13 = vld [vmem:[%s904_s23 + $0xa0] sm:$0xff] }
  0x3c   : > { %v298_v42 = vmul.f32 %v234_v31, %v234_v31  ;;  %v360_v43 = vmul.f32 %v296_v32, %v232_v21  ;;  %v420_v44 = vadd.f32 %v419_v34, %v358_v33  ;;  %v237_v46 = vmax.f32 %v173_v40, 1e-06  ;;  %v183_v14 = vld [vmem:[%s904_s23 + $0xa8] sm:$0xff]  ;;  %v184_v19 = vld [vmem:[%s904_s23 + $0xb0] sm:$0xff]  ;;  %v185_v20 = vld [vmem:[%s904_s23 + $0xb8] sm:$0xff] }
  0x3d   : > { %v299_v47 = vmul.f32 %v235_v36, %v235_v36  ;;  %v361_v48 = vmul.f32 %v297_v37, %v233_v26  ;;  %v457_v49 = vadd.f32 %v456_v39, %v359_v38  ;;  %v238_v52 = vmax.f32 %v174_v45, 1e-06  ;;  %v186_v25 = vld [vmem:[%s904_s23 + $0xc0] sm:$0xff]  ;;  %v187_v26 = vld [vmem:[%s904_s23 + $0xc8] sm:$0xff]  ;;  %v188_v35 = vld [vmem:[%s904_s23 + $0xd0] sm:$0xff] }
  0x3e   : > { %v300_v53 = vmul.f32 %v236_v41, %v236_v41  ;;  %v362_v54 = vmul.f32 %v298_v42, %v234_v31  ;;  %v421_v55 = vadd.f32 %v420_v44, %v360_v43  ;;  %v239_v57 = vmax.f32 %v175_v50, 1e-06  ;;  %v190_v43 = vld [vmem:[%s904_s23 + $0xe0] sm:$0xff]  ;;  %v191_v44 = vld [vmem:[%s904_s23 + $0xe8] sm:$0xff] }
  0x3f   : > { %v301_v58 = vmul.f32 %v237_v46, %v237_v46  ;;  %v363_v59 = vmul.f32 %v299_v47, %v235_v36  ;;  %v458_v60 = vadd.f32 %v457_v49, %v361_v48  ;;  %v240_v61 = vmax.f32 %v176_v51, 1e-06  ;;  %v189_v36 = vld [vmem:[%s904_s23 + $0xd8] sm:$0xff] }
  0x40   : > { %v241_v2 = vmax.f32 %v177_v56, 1e-06  ;;  %v302_v3 = vmul.f32 %v238_v52, %v238_v52  ;;  %v364_v4 = vmul.f32 %v300_v53, %v236_v41  ;;  %v422_v5 = vadd.f32 %v421_v55, %v362_v54  ;;  %v192_v53 = vld [vmem:[%s904_s23 + $0xf0] sm:$0xff]  ;;  %v193_v54 = vld [vmem:[%s904_s23 + $0xf8] sm:$0xff] }
  0x41   : > { %v303_v6 = vmul.f32 %v239_v57, %v239_v57  ;;  %v365_v7 = vmul.f32 %v301_v58, %v237_v46  ;;  %v459_v8 = vadd.f32 %v458_v60, %v363_v59  ;;  %v242_v11 = vmax.f32 %v178_v62, 1e-06 }
  0x42   : > { %v243_v12 = vmax.f32 %v179_v63, 1e-06  ;;  %v304_v15 = vmul.f32 %v240_v61, %v240_v61  ;;  %v305_v16 = vmul.f32 %v241_v2, %v241_v2  ;;  %v366_v17 = vmul.f32 %v302_v3, %v238_v52  ;;  %v194_v63 = vld [vmem:[%s904_s23 + $0x100] sm:$0xff] }
  0x43   : > { %v423_v18 = vadd.f32 %v422_v5, %v364_v4  ;;  %v244_v21 = vmax.f32 %v180_v9, 1e-06  ;;  %v245_v22 = vmax.f32 %v181_v10, 1e-06  ;;  %v367_v23 = vmul.f32 %v303_v6, %v239_v57 }
  0x44   : > { %v460_v24 = vadd.f32 %v459_v8, %v365_v7  ;;  %v246_v27 = vmax.f32 %v182_v13, 1e-06  ;;  %v247_v28 = vmax.f32 %v183_v14, 1e-06  ;;  %v306_v29 = vmul.f32 %v242_v11, %v242_v11 }
  0x45   : > { %v307_v30 = vmul.f32 %v243_v12, %v243_v12  ;;  %v248_v31 = vmax.f32 %v184_v19, 1e-06  ;;  %v249_v32 = vmax.f32 %v185_v20, 1e-06  ;;  %v368_v33 = vmul.f32 %v304_v15, %v240_v61 }
  0x46   : > { %v424_v34 = vadd.f32 %v423_v18, %v366_v17  ;;  %v308_v37 = vmul.f32 %v244_v21, %v244_v21  ;;  %v309_v38 = vmul.f32 %v245_v22, %v245_v22  ;;  %v369_v39 = vmul.f32 %v305_v16, %v241_v2  ;;  %v195_v2 = vld [vmem:[%s904_s23 + $0x108] sm:$0xff] }
  0x47   : > { %v461_v40 = vadd.f32 %v460_v24, %v367_v23  ;;  %v250_v41 = vmax.f32 %v186_v25, 1e-06  ;;  %v251_v42 = vmax.f32 %v187_v26, 1e-06  ;;  %v310_v45 = vmul.f32 %v246_v27, %v246_v27 }
  0x48   : > { %v311_v46 = vmul.f32 %v247_v28, %v247_v28  ;;  %v370_v47 = vmul.f32 %v306_v29, %v242_v11  ;;  %v371_v48 = vmul.f32 %v307_v30, %v243_v12  ;;  %v252_v49 = vmax.f32 %v188_v35, 1e-06  ;;  %v196_v11 = vld [vmem:[%s904_s23 + $0x110] sm:$0xff]  ;;  %v197_v12 = vld [vmem:[%s904_s23 + $0x118] sm:$0xff] }
  0x49   : > { %v253_v50 = vmax.f32 %v189_v36, 1e-06  ;;  %v312_v51 = vmul.f32 %v248_v31, %v248_v31  ;;  %v313_v52 = vmul.f32 %v249_v32, %v249_v32  ;;  %v372_v55 = vmul.f32 %v308_v37, %v244_v21  ;;  %v198_v21 = vld [vmem:[%s904_s23 + $0x120] sm:$0xff] }
  0x4a   : > { %v373_v56 = vmul.f32 %v309_v38, %v245_v22  ;;  %v425_v57 = vadd.f32 %v424_v34, %v368_v33  ;;  %v462_v58 = vadd.f32 %v461_v40, %v369_v39  ;;  %v254_v59 = vmax.f32 %v190_v43, 1e-06  ;;  %v199_v22 = vld [vmem:[%s904_s23 + $0x128] sm:$0xff] }
  0x4b   : > { %v255_v60 = vmax.f32 %v191_v44, 1e-06  ;;  %v314_v61 = vmul.f32 %v250_v41, %v250_v41  ;;  %v315_v62 = vmul.f32 %v251_v42, %v251_v42  ;;  %v374_v3 = vmul.f32 %v310_v45, %v246_v27 }
  0x4c   : > { %v375_v4 = vmul.f32 %v311_v46, %v247_v28  ;;  %v426_v5 = vadd.f32 %v425_v57, %v370_v47  ;;  %v463_v6 = vadd.f32 %v462_v58, %v371_v48  ;;  %v256_v7 = vmax.f32 %v192_v53, 1e-06 }
  0x4d   : > { %v257_v8 = vmax.f32 %v193_v54, 1e-06  ;;  %v316_v9 = vmul.f32 %v252_v49, %v252_v49  ;;  %v317_v10 = vmul.f32 %v253_v50, %v253_v50  ;;  %v376_v13 = vmul.f32 %v312_v51, %v248_v31  ;;  %v200_v31 = vld [vmem:[%s904_s23 + $0x130] sm:$0xff] }
  0x4e   : > { %v377_v14 = vmul.f32 %v313_v52, %v249_v32  ;;  %v427_v15 = vadd.f32 %v426_v5, %v372_v55  ;;  %v464_v16 = vadd.f32 %v463_v6, %v373_v56  ;;  %v258_v17 = vmax.f32 %v194_v63, 1e-06  ;;  %v201_v32 = vld [vmem:[%s904_s23 + $0x138] sm:$0xff]  ;;  %v204_v51 = vld [vmem:[%s904_s23 + $0x150] sm:$0xff] }
  0x4f   : > { %v259_v18 = vmax.f32 %v195_v2, 1e-06  ;;  %v318_v19 = vmul.f32 %v254_v59, %v254_v59  ;;  %v319_v20 = vmul.f32 %v255_v60, %v255_v60  ;;  %v378_v23 = vmul.f32 %v314_v61, %v250_v41  ;;  %v202_v41 = vld [vmem:[%s904_s23 + $0x140] sm:$0xff]  ;;  %v205_v52 = vld [vmem:[%s904_s23 + $0x158] sm:$0xff] }
  0x50   : > { %v379_v24 = vmul.f32 %v315_v62, %v251_v42  ;;  %v428_v25 = vadd.f32 %v427_v15, %v374_v3  ;;  %v465_v26 = vadd.f32 %v464_v16, %v375_v4  ;;  %v260_v27 = vmax.f32 %v196_v11, 1e-06  ;;  %v203_v42 = vld [vmem:[%s904_s23 + $0x148] sm:$0xff]  ;;  %v206_v61 = vld [vmem:[%s904_s23 + $0x160] sm:$0xff] }
  0x51   : > { %v261_v28 = vmax.f32 %v197_v12, 1e-06  ;;  %v320_v29 = vmul.f32 %v256_v7, %v256_v7  ;;  %v321_v30 = vmul.f32 %v257_v8, %v257_v8  ;;  %v380_v33 = vmul.f32 %v316_v9, %v252_v49  ;;  %v207_v62 = vld [vmem:[%s904_s23 + $0x168] sm:$0xff]  ;;  %v208_v9 = vld [vmem:[%s904_s23 + $0x170] sm:$0xff] }
  0x52   : > { %v381_v34 = vmul.f32 %v317_v10, %v253_v50  ;;  %v429_v35 = vadd.f32 %v428_v25, %v376_v13  ;;  %v466_v36 = vadd.f32 %v465_v26, %v377_v14  ;;  %v262_v37 = vmax.f32 %v198_v21, 1e-06  ;;  %v209_v10 = vld [vmem:[%s904_s23 + $0x178] sm:$0xff] }
  0x53   : > { %v263_v38 = vmax.f32 %v199_v22, 1e-06  ;;  %v322_v39 = vmul.f32 %v258_v17, %v258_v17  ;;  %v323_v40 = vmul.f32 %v259_v18, %v259_v18  ;;  %v382_v43 = vmul.f32 %v318_v19, %v254_v59  ;;  %v210_v19 = vld [vmem:[%s904_s23 + $0x180] sm:$0xff] }
  0x54   : > { %v383_v44 = vmul.f32 %v319_v20, %v255_v60  ;;  %v430_v45 = vadd.f32 %v429_v35, %v378_v23  ;;  %v467_v46 = vadd.f32 %v466_v36, %v379_v24  ;;  %v264_v47 = vmax.f32 %v200_v31, 1e-06  ;;  %v211_v20 = vld [vmem:[%s904_s23 + $0x188] sm:$0xff] }
  0x55   : > { %v265_v48 = vmax.f32 %v201_v32, 1e-06  ;;  %v324_v49 = vmul.f32 %v260_v27, %v260_v27  ;;  %v325_v50 = vmul.f32 %v261_v28, %v261_v28  ;;  %v384_v53 = vmul.f32 %v320_v29, %v256_v7  ;;  %v212_v29 = vld [vmem:[%s904_s23 + $0x190] sm:$0xff] }
  0x56   : > { %v385_v54 = vmul.f32 %v321_v30, %v257_v8  ;;  %v431_v55 = vadd.f32 %v430_v45, %v380_v33  ;;  %v468_v56 = vadd.f32 %v467_v46, %v381_v34  ;;  %v266_v57 = vmax.f32 %v202_v41, 1e-06  ;;  %v213_v30 = vld [vmem:[%s904_s23 + $0x198] sm:$0xff] }
  0x57   : > { %v267_v58 = vmax.f32 %v203_v42, 1e-06  ;;  %v326_v59 = vmul.f32 %v262_v37, %v262_v37  ;;  %v327_v60 = vmul.f32 %v263_v38, %v263_v38  ;;  %v386_v63 = vmul.f32 %v322_v39, %v258_v17  ;;  %v214_v39 = vld [vmem:[%s904_s23 + $0x1a0] sm:$0xff] }
  0x58   : > { %v387_v2 = vmul.f32 %v323_v40, %v259_v18  ;;  %v432_v3 = vadd.f32 %v431_v55, %v382_v43  ;;  %v469_v4 = vadd.f32 %v468_v56, %v383_v44  ;;  %v268_v5 = vmax.f32 %v204_v51, 1e-06  ;;  %v215_v40 = vld [vmem:[%s904_s23 + $0x1a8] sm:$0xff] }
  0x59   : > { %v269_v6 = vmax.f32 %v205_v52, 1e-06  ;;  %v328_v7 = vmul.f32 %v264_v47, %v264_v47  ;;  %v329_v8 = vmul.f32 %v265_v48, %v265_v48  ;;  %v388_v11 = vmul.f32 %v324_v49, %v260_v27  ;;  %v216_v49 = vld [vmem:[%s904_s23 + $0x1b0] sm:$0xff] }
  0x5a   : > { %v389_v12 = vmul.f32 %v325_v50, %v261_v28  ;;  %v433_v13 = vadd.f32 %v432_v3, %v384_v53  ;;  %v470_v14 = vadd.f32 %v469_v4, %v385_v54  ;;  %v270_v15 = vmax.f32 %v206_v61, 1e-06  ;;  %v217_v50 = vld [vmem:[%s904_s23 + $0x1b8] sm:$0xff] }
  0x5b   : > { %v271_v16 = vmax.f32 %v207_v62, 1e-06  ;;  %v330_v17 = vmul.f32 %v266_v57, %v266_v57  ;;  %v331_v18 = vmul.f32 %v267_v58, %v267_v58  ;;  %v390_v21 = vmul.f32 %v326_v59, %v262_v37  ;;  %v218_v59 = vld [vmem:[%s904_s23 + $0x1c0] sm:$0xff] }
  0x5c   : > { %v391_v22 = vmul.f32 %v327_v60, %v263_v38  ;;  %v434_v23 = vadd.f32 %v433_v13, %v386_v63  ;;  %v471_v24 = vadd.f32 %v470_v14, %v387_v2  ;;  %v272_v25 = vmax.f32 %v208_v9, 1e-06  ;;  %v219_v60 = vld [vmem:[%s904_s23 + $0x1c8] sm:$0xff] }
  0x5d   : > { %v273_v26 = vmax.f32 %v209_v10, 1e-06  ;;  %v332_v27 = vmul.f32 %v268_v5, %v268_v5  ;;  %v333_v28 = vmul.f32 %v269_v6, %v269_v6  ;;  %v392_v31 = vmul.f32 %v328_v7, %v264_v47  ;;  %v220_v7 = vld [vmem:[%s904_s23 + $0x1d0] sm:$0xff] }
  0x5e   : > { %v393_v32 = vmul.f32 %v329_v8, %v265_v48  ;;  %v435_v33 = vadd.f32 %v434_v23, %v388_v11  ;;  %v472_v34 = vadd.f32 %v471_v24, %v389_v12  ;;  %v274_v35 = vmax.f32 %v210_v19, 1e-06  ;;  %v221_v8 = vld [vmem:[%s904_s23 + $0x1d8] sm:$0xff] }
  0x5f   : > { %v275_v36 = vmax.f32 %v211_v20, 1e-06  ;;  %v334_v37 = vmul.f32 %v270_v15, %v270_v15  ;;  %v335_v38 = vmul.f32 %v271_v16, %v271_v16  ;;  %v394_v41 = vmul.f32 %v330_v17, %v266_v57  ;;  %v222_v17 = vld [vmem:[%s904_s23 + $0x1e0] sm:$0xff] }
  0x60   : > { %v395_v42 = vmul.f32 %v331_v18, %v267_v58  ;;  %v436_v43 = vadd.f32 %v435_v33, %v390_v21  ;;  %v473_v44 = vadd.f32 %v472_v34, %v391_v22  ;;  %v276_v45 = vmax.f32 %v212_v29, 1e-06  ;;  %v223_v18 = vld [vmem:[%s904_s23 + $0x1e8] sm:$0xff] }
  0x61   : > { %v277_v46 = vmax.f32 %v213_v30, 1e-06  ;;  %v336_v47 = vmul.f32 %v272_v25, %v272_v25  ;;  %v337_v48 = vmul.f32 %v273_v26, %v273_v26  ;;  %v396_v51 = vmul.f32 %v332_v27, %v268_v5 }
  0x62   : > { %v397_v52 = vmul.f32 %v333_v28, %v269_v6  ;;  %v437_v53 = vadd.f32 %v436_v43, %v392_v31  ;;  %v474_v54 = vadd.f32 %v473_v44, %v393_v32  ;;  %v278_v55 = vmax.f32 %v214_v39, 1e-06 }
  0x63   : > { %v279_v56 = vmax.f32 %v215_v40, 1e-06  ;;  %v338_v57 = vmul.f32 %v274_v35, %v274_v35  ;;  %v339_v58 = vmul.f32 %v275_v36, %v275_v36  ;;  %v398_v61 = vmul.f32 %v334_v37, %v270_v15 }
  0x64   : > { %v399_v62 = vmul.f32 %v335_v38, %v271_v16  ;;  %v438_v63 = vadd.f32 %v437_v53, %v394_v41  ;;  %v475_v2 = vadd.f32 %v474_v54, %v395_v42  ;;  %v280_v3 = vmax.f32 %v216_v49, 1e-06 }
  0x65   : > { %v281_v4 = vmax.f32 %v217_v50, 1e-06  ;;  %v340_v5 = vmul.f32 %v276_v45, %v276_v45  ;;  %v341_v6 = vmul.f32 %v277_v46, %v277_v46  ;;  %v400_v9 = vmul.f32 %v336_v47, %v272_v25  ;;  %v224_v25 = vld [vmem:[%s904_s23 + $0x1f0] sm:$0xff] }
  0x66   : > { %v401_v10 = vmul.f32 %v337_v48, %v273_v26  ;;  %v439_v11 = vadd.f32 %v438_v63, %v396_v51  ;;  %v476_v12 = vadd.f32 %v475_v2, %v397_v52  ;;  %v282_v13 = vmax.f32 %v218_v59, 1e-06  ;;  %v225_v26 = vld [vmem:[%s904_s23 + $0x1f8] sm:$0xff] }
  0x67   : > { %v283_v14 = vmax.f32 %v219_v60, 1e-06  ;;  %v342_v15 = vmul.f32 %v278_v55, %v278_v55  ;;  %v343_v16 = vmul.f32 %v279_v56, %v279_v56  ;;  %v402_v19 = vmul.f32 %v338_v57, %v274_v35 }
  0x68   : > { %v403_v20 = vmul.f32 %v339_v58, %v275_v36  ;;  %v440_v21 = vadd.f32 %v439_v11, %v398_v61  ;;  %v477_v22 = vadd.f32 %v476_v12, %v399_v62  ;;  %v284_v23 = vmax.f32 %v220_v7, 1e-06 }
  0x69   : > { %v285_v24 = vmax.f32 %v221_v8, 1e-06  ;;  %v344_v27 = vmul.f32 %v280_v3, %v280_v3  ;;  %v345_v28 = vmul.f32 %v281_v4, %v281_v4  ;;  %v404_v29 = vmul.f32 %v340_v5, %v276_v45 }
  0x6a   : > { %v405_v30 = vmul.f32 %v341_v6, %v277_v46  ;;  %v441_v31 = vadd.f32 %v440_v21, %v400_v9  ;;  %v478_v32 = vadd.f32 %v477_v22, %v401_v10  ;;  %v286_v33 = vmax.f32 %v222_v17, 1e-06 }
  0x6b   : > { %v287_v34 = vmax.f32 %v223_v18, 1e-06  ;;  %v346_v37 = vmul.f32 %v282_v13, %v282_v13  ;;  %v347_v38 = vmul.f32 %v283_v14, %v283_v14  ;;  %v406_v39 = vmul.f32 %v342_v15, %v278_v55 }
  0x6c   : > { %v407_v40 = vmul.f32 %v343_v16, %v279_v56  ;;  %v442_v35 = vadd.f32 %v441_v31, %v402_v19  ;;  %v479_v36 = vadd.f32 %v478_v32, %v403_v20  ;;  %v288_v41 = vmax.f32 %v224_v25, 1e-06 }
  0x6d   : > { %v289_v42 = vmax.f32 %v225_v26, 1e-06  ;;  %v348_v43 = vmul.f32 %v284_v23, %v284_v23  ;;  %v349_v44 = vmul.f32 %v285_v24, %v285_v24  ;;  %v408_v47 = vmul.f32 %v344_v27, %v280_v3 }
  0x6e   : > { %v409_v48 = vmul.f32 %v345_v28, %v281_v4  ;;  %v443_v49 = vadd.f32 %v442_v35, %v404_v29  ;;  %v480_v50 = vadd.f32 %v479_v36, %v405_v30  ;;  %v350_v45 = vmul.f32 %v286_v33, %v286_v33  ;;  %v418_v30 = vld [vmem:[#allocation2] sm:$0x3] }
  0x6f   : > { %v351_v46 = vmul.f32 %v287_v34, %v287_v34  ;;  %v410_v51 = vmul.f32 %v346_v37, %v282_v13  ;;  %v411_v52 = vmul.f32 %v347_v38, %v283_v14  ;;  %v352_v57 = vmul.f32 %v288_v41, %v288_v41 }
  0x70   : > { %v444_v53 = vadd.f32 %v443_v49, %v406_v39  ;;  %v481_v54 = vadd.f32 %v480_v50, %v407_v40  ;;  %v353_v58 = vmul.f32 %v289_v42, %v289_v42  ;;  %v412_v55 = vmul.f32 %v348_v43, %v284_v23 }
  0x71   : > { %v413_v56 = vmul.f32 %v349_v44, %v285_v24  ;;  %v414_v61 = vmul.f32 %v350_v45, %v286_v33  ;;  %v415_v62 = vmul.f32 %v351_v46, %v287_v34  ;;  %v416_v3 = vmul.f32 %v352_v57, %v288_v41 }
  0x72   : > { %v445_v59 = vadd.f32 %v444_v53, %v408_v47  ;;  %v482_v60 = vadd.f32 %v481_v54, %v409_v48  ;;  %v417_v4 = vmul.f32 %v353_v58, %v289_v42  ;;  %v796_v15 = vmov 1966171168  }
  0x73   : > { %v497_v16 = vunpack.c.l.s4 %v796_v15  ;;  %v500_v22 = vshrl.u32 %v157_v0, 7 }
  0x74   : > { %v446_v63 = vadd.f32 %v445_v59, %v410_v51  ;;  %v483_v2 = vadd.f32 %v482_v60, %v411_v52 }
  0x75   : > { %v498_v21 = vunpack.c.0.s8 %v497_v16  ;;  %v532_v35 = vsub.s32 0, %v500_v22  ;;  %v536_v36 = vsub.s32 1, %v500_v22 }
  0x76   : > { %v447_v5 = vadd.f32 %v446_v63, %v412_v55  ;;  %v484_v6 = vadd.f32 %v483_v2, %v413_v56 }
  0x77   : > { %v501_v25 = vsub.s32 %v498_v21, %v500_v22 }
  0x78   : > { %v448_v7 = vadd.f32 %v447_v5, %v414_v61  ;;  %v485_v8 = vadd.f32 %v484_v6, %v415_v62 }
  0x7a   : > { %v449_v9 = vadd.f32 %v448_v7, %v416_v3  ;;  %v486_v10 = vadd.f32 %v485_v8, %v417_v4 }
  0x7c   : > { %v450_v11 = vrot.slane %v449_v9, 4  ;;  %v487_v12 = vrot.slane %v486_v10, 4 }
  0x7e   : > { %v451_v13 = vadd.f32 %v450_v11, %v449_v9  ;;  %v488_v14 = vadd.f32 %v487_v12, %v486_v10 }
  0x80   : > { %v452_v17 = vrot.slane %v451_v13, 2  ;;  %v489_v18 = vrot.slane %v488_v14, 2 }
  0x82   : > { %v453_v19 = vadd.f32 %v452_v17, %v451_v13  ;;  %v490_v20 = vadd.f32 %v489_v18, %v488_v14 }
  0x84   : > { %v454_v23 = vrot.slane %v453_v19, 1  ;;  %v491_v24 = vrot.slane %v490_v20, 1 }
  0x86   : > { %v455_v27 = vadd.f32 %v454_v23, %v453_v19  ;;  %v492_v28 = vadd.f32 %v491_v24, %v490_v20 }
  0x88   : > { %v495_v26 = vcombine.low %v455_v27, %v492_v28 }
  0x8a   : > { %v502_v29 = vrot.slane %v495_v26, %v501_v25 }
  0x8c   : > { %v509_v31 = vrot.slane %v502_v29, %v501_v25 }
  0x8e   : > { %v511_v32 = vadd.f32 %v509_v31, %v418_v30 }
  0x90   : > { %516 = vst.msk [vmem:[#allocation2] sm:$0x3] %vm911_vm0, %v511_v32 }
  0x97   : > { %v520_v33 = vld [vmem:[#allocation2] sm:$0x3] }
  0x98   : > { %v521_v34 = vmul.f32 0.00390625, %v520_v33 }
  0x9a   : > { %v522_v37 = vmax.f32 %v521_v34, 1e-30 }
  0x9c   : > { %704 = vlog2.f32 %v522_v37 }
  0xa6   : > { %v705_v38 = vpop.eup %704 }
  0xa7   : > { %v524_v39 = vmul.f32 0.6931472, %v705_v38 }
  0xa9   : > { %v525_v0 = vmul.f32 0.33333334, %v524_v39 }
  0xab   : > { %v526_v40 = vmul.f32 1.442695, %v525_v0 }
  0xad   : > { %706 = vpow2.f32 %v526_v40 }
  0xb7   : > { %v707_v41 = vpop.eup %706 }
  0xb8   : > { %v528_v42 = vmul.f32 %v707_v41, %v707_v41 }
  0xba   : > { %v533_v43 = vrot.slane %v528_v42, %v532_v35  ;;  %v537_v44 = vrot.slane %v528_v42, %v536_v36 }
  0xbc   : > { %v541_v47 = vsel %vm540_vm1, %v533_v43, 0.0  ;;  %v542_v48 = vsel %vm540_vm1, %v537_v44, 0.0 }
  0xbd   : > { %v543_v49 = vadd.f32 %v542_v48, %v541_v47 }
  0xbf   : > { %544 = vadd.xlane.f32.xlu0 %v543_v49 }
 0x14c   : > { %v545_v50 = vpop.xlane.xlu0 %544 }
 0x14d   : > { %v546_v45 = vmax.f32 %v545_v50, 1e-24 }
 0x14f   : > { %708 = vrsqrt.f32 %v546_v45 }
 0x159   : > { %v709_v46 = vpop.eup %708 }
 0x15a   : > { %v552_v51 = vrot.slane %v709_v46, %v532_v35 }
 0x15c   : > { %v554_v52 = vmul.f32 %v707_v41, %v552_v51 }
 0x15e   : > { %555 = vst.msk [vmem:[%s152_s26] sm:$0x3] %vm911_vm0, %v554_v52 }
 0x15f PF: > { %s14_s11 = sadd.s32 1, %s790_s11   ;;  %s1016_s6 = smov %s774_s7 }
 0x160   : > { %p11_p9 = scmp.ge.s32.totalorder %s14_s11, 4   ;;  %s1017_s7 = smov %s778_s8 }
 0x161   : > { %s1018_s8 = smov %s856_s18  ;;  %s1019_s9 = smov %s786_s10 }
 0x162   : > { %s1020_s10 = smov %s1022_s13  ;;  %13 = sbr.rel (!%p11_p9) target bundleno = 4 (0x4), region = 72 }
 0x169   :  { %575 = vsyncpa [#allocation4], 1 }
 0x16a   :  { %577 = vsyncpa [#allocation4 + $0x1], 1 }

</bundles_post_ra>
